<compile_context>
chip_gen: v5e
topology: v5e:2x2
jax: 0.10.0
libtpu: 0.0.40
codegen_flags: <defaults>
</compile_context>

<pallas_src>
import functools

import jax
import jax.numpy as jnp
from jax.experimental import pallas as pl
from jax.experimental.pallas import tpu as pltpu

GAMMA = 2.0   # hardcoded as explicit squares below
ALPHA = 0.25
LANES = 128
SUBLANES = 8
MAX_TILE_ROWS = 1024     # ~0.5 MiB per f32 input tile; sweepable 512-2048
NUM_PARTITIONS = 4       # leading "parallel" axis (multi-TensorCore on v7x)


def _round_up(a, b):
    return ((a + b - 1) // b) * b


def _focal_kernel(p_ref, t_ref, o_ref, *, n_valid, n_padded, tile_rows,
                  tiles_per_part):
    j = pl.program_id(1)

    @pl.when(j == 0)
    def _():
        o_ref[...] = jnp.zeros_like(o_ref)

    x = p_ref[...].astype(jnp.float32)
    t = t_ref[...].astype(jnp.float32)

    # Fused stable sigmoid / log-sigmoid: 1 exp + 1 log on the EUP.
    abs_x = jnp.abs(x)
    e = jnp.exp(-abs_x)                         # exp(-|x|) in (0, 1]
    lg = jnp.log(1.0 + e)                       # softplus(-|x|)
    log_pt = -(jnp.maximum(-x, 0.0) + lg)       # log(sigmoid(x))
    log_1m_pt = -(jnp.maximum(x, 0.0) + lg)     # log(1 - sigmoid(x))
    inv = 1.0 / (1.0 + e)
    pt = jnp.where(x >= 0.0, inv, e * inv)      # stable sigmoid(x)
    one_m_pt = 1.0 - pt

    # gamma == 2 -> squares on the VPU (no pow -> exp/log on the EUP).
    loss = (-ALPHA * (one_m_pt * one_m_pt) * t * log_pt
            - (1.0 - ALPHA) * (pt * pt) * (1.0 - t) * log_1m_pt)

    if n_valid != n_padded:
        # Only the tail block actually has padded lanes; the select is cheap
        # VPU work and avoids 0 * (possible inf/NaN) pitfalls.
        row_ids = jax.lax.broadcasted_iota(jnp.int32, loss.shape, 0)
        lane_ids = jax.lax.broadcasted_iota(jnp.int32, loss.shape, 1)
        row0 = (pl.program_id(0) * tiles_per_part + j) * tile_rows
        gidx = (row0 + row_ids) * LANES + lane_ids
        loss = jnp.where(gidx < n_valid, loss, 0.0)

    # Elementwise accumulate into the VMEM-resident output block (P3 pattern).
    o_ref[...] += loss


def bce_focal_loss(predict, target):
    """Mean BCE focal loss over all elements (matches the PyTorch module)."""
    assert predict.shape == target.shape
    n = predict.size

    rows_min = -(-n // LANES)
    if rows_min <= MAX_TILE_ROWS:
        tile_rows = _round_up(max(rows_min, SUBLANES), SUBLANES)
        parts = 1
    else:
        tile_rows = MAX_TILE_ROWS
        tiles = -(-rows_min // tile_rows)
        parts = min(NUM_PARTITIONS, tiles)

    rows_padded = _round_up(rows_min, tile_rows * parts)
    tiles_per_part = rows_padded // (tile_rows * parts)
    n_pad = rows_padded * LANES

    # No dtype upcast in the wrapper (bf16 inputs stay bf16 on the wire);
    # fast path is a pure reshape, otherwise a single jnp.pad.
    p_flat = predict.reshape(-1)
    t_flat = target.reshape(-1)
    if n_pad != n:
        p_flat = jnp.pad(p_flat, (0, n_pad - n))
        t_flat = jnp.pad(t_flat, (0, n_pad - n))
    p2 = p_flat.reshape(rows_padded, LANES)
    t2 = t_flat.reshape(rows_padded, LANES)

    kernel = functools.partial(
        _focal_kernel, n_valid=n, n_padded=n_pad,
        tile_rows=tile_rows, tiles_per_part=tiles_per_part)

    in_spec = pl.BlockSpec((tile_rows, LANES),
                           lambda p, j: (p * tiles_per_part + j, 0))

    out_bytes = parts * tile_rows * LANES * 4
    partials = pl.pallas_call(
        kernel,
        out_shape=jax.ShapeDtypeStruct((parts * tile_rows, LANES), jnp.float32),
        grid_spec=pltpu.PrefetchScalarGridSpec(
            num_scalar_prefetch=0,
            grid=(parts, tiles_per_part),
            in_specs=[in_spec, in_spec],
            out_specs=pl.BlockSpec((tile_rows, LANES), lambda p, j: (p, 0)),
        ),
        compiler_params=pltpu.CompilerParams(
            dimension_semantics=("parallel", "arbitrary")),
        cost_estimate=pl.CostEstimate(
            flops=20 * n_pad,
            transcendentals=2 * n_pad,
            bytes_accessed=(p2.size * p2.dtype.itemsize
                            + t2.size * t2.dtype.itemsize
                            + out_bytes),
        ),
    )(p2, t2)

    # Tiny (<= ~1 MiB) final reduction of the lane-dense partial sums.
    return jnp.sum(partials) / jnp.float32(n)


def _reference(predict, target):
    pt = jax.nn.sigmoid(predict.astype(jnp.float32))
    t = target.astype(jnp.float32)
    loss = (-ALPHA * (1 - pt) ** GAMMA * t * jnp.log(pt)
            - (1 - ALPHA) * pt ** GAMMA * (1 - t) * jnp.log(1 - pt))
    return jnp.mean(loss)


if __name__ == "__main__":
    key = jax.random.PRNGKey(0)
    k1, k2 = jax.random.split(key)
    # NCHW-shaped logits and binary targets.
    predict = jax.random.normal(k1, (2, 4, 16, 16), dtype=jnp.float32)
    target = (jax.random.uniform(k2, (2, 4, 16, 16)) > 0.5).astype(jnp.float32)

    loss = jax.block_until_ready(bce_focal_loss(predict, target))
    ref = _reference(predict, target)
    assert jnp.allclose(loss, ref, rtol=1e-5, atol=1e-6), (loss, ref)
    print("KERNEL_OK")
</pallas_src>

<mosaic_0001>
module attributes {stable_mosaic.version = 11 : i64} {
  func.func @_focal_kernel(%arg0: i32, %arg1: i32, %arg2: memref<16x128xf32, #tpu.memory_space<vmem>>, %arg3: memref<16x128xf32, #tpu.memory_space<vmem>>, %arg4: memref<16x128xf32, #tpu.memory_space<vmem>>) attributes {dimension_semantics = [#tpu.dimension_semantics<parallel>, #tpu.dimension_semantics<arbitrary>], iteration_bounds = array<i64: 1, 1>, scalar_prefetch = 0 : i64, scratch_operands = 0 : i64, tpu.core_type = #tpu.core_type<tc>, window_params = [{transform_indices = @transform_0, window_bounds = array<i64: 16, 128>}, {transform_indices = @transform_1, window_bounds = array<i64: 16, 128>}, {transform_indices = @transform_2, window_bounds = array<i64: 16, 128>}]} {
    %c0_i32 = arith.constant 0 : i32
    %0 = arith.cmpi eq, %arg1, %c0_i32 : i32
    %1 = arith.extui %0 : i1 to i32
    %c0_i32_0 = arith.constant 0 : i32
    %2 = arith.cmpi ne, %1, %c0_i32_0 : i32
    scf.if %2 {
      %cst_21 = arith.constant 0.000000e+00 : f32
      %50 = vector.broadcast %cst_21 : f32 to vector<16x128xf32>
      %c0_22 = arith.constant 0 : index
      %c0_23 = arith.constant 0 : index
      %51 = vector.load %arg4[%c0_22, %c0_23] : memref<16x128xf32, #tpu.memory_space<vmem>>, vector<16x128xf32>
      tpu.vector_store %arg4[%c0_22, %c0_23], %50 {strides = array<i32>} : memref<16x128xf32, #tpu.memory_space<vmem>>, vector<16x128xf32>,
    } else {
    }
    %c0 = arith.constant 0 : index
    %c0_1 = arith.constant 0 : index
    %3 = vector.load %arg2[%c0, %c0_1] : memref<16x128xf32, #tpu.memory_space<vmem>>, vector<16x128xf32>
    %c0_2 = arith.constant 0 : index
    %c0_3 = arith.constant 0 : index
    %4 = vector.load %arg3[%c0_2, %c0_3] : memref<16x128xf32, #tpu.memory_space<vmem>>, vector<16x128xf32>
    %5 = math.absf %3 : vector<16x128xf32>
    %cst = arith.constant 0.000000e+00 : f32
    %6 = vector.broadcast %cst : f32 to vector<16x128xf32>
    %7 = arith.subf %6, %5 : vector<16x128xf32>
    %8 = math.exp %7 : vector<16x128xf32>
    %cst_4 = arith.constant 1.000000e+00 : f32
    %9 = vector.broadcast %cst_4 : f32 to vector<16x128xf32>
    %10 = arith.addf %9, %8 : vector<16x128xf32>
    %11 = math.log %10 : vector<16x128xf32>
    %cst_5 = arith.constant 0.000000e+00 : f32
    %12 = vector.broadcast %cst_5 : f32 to vector<16x128xf32>
    %13 = arith.subf %12, %3 : vector<16x128xf32>
    %cst_6 = arith.constant 0.000000e+00 : f32
    %14 = vector.broadcast %cst_6 : f32 to vector<16x128xf32>
    %15 = arith.maximumf %13, %14 : vector<16x128xf32>
    %16 = arith.addf %15, %11 : vector<16x128xf32>
    %cst_7 = arith.constant 0.000000e+00 : f32
    %17 = vector.broadcast %cst_7 : f32 to vector<16x128xf32>
    %18 = arith.subf %17, %16 : vector<16x128xf32>
    %cst_8 = arith.constant 0.000000e+00 : f32
    %19 = vector.broadcast %cst_8 : f32 to vector<16x128xf32>
    %20 = arith.maximumf %3, %19 : vector<16x128xf32>
    %21 = arith.addf %20, %11 : vector<16x128xf32>
    %cst_9 = arith.constant 0.000000e+00 : f32
    %22 = vector.broadcast %cst_9 : f32 to vector<16x128xf32>
    %23 = arith.subf %22, %21 : vector<16x128xf32>
    %cst_10 = arith.constant 1.000000e+00 : f32
    %24 = vector.broadcast %cst_10 : f32 to vector<16x128xf32>
    %25 = arith.addf %24, %8 : vector<16x128xf32>
    %cst_11 = arith.constant 1.000000e+00 : f32
    %26 = vector.broadcast %cst_11 : f32 to vector<16x128xf32>
    %27 = arith.divf %26, %25 : vector<16x128xf32>
    %cst_12 = arith.constant 0.000000e+00 : f32
    %28 = vector.broadcast %cst_12 : f32 to vector<16x128xf32>
    %29 = arith.cmpf oge, %3, %28 : vector<16x128xf32>
    %30 = arith.mulf %8, %27 : vector<16x128xf32>
    %31 = arith.select %29, %27, %30 : vector<16x128xi1>, vector<16x128xf32>
    %cst_13 = arith.constant 1.000000e+00 : f32
    %32 = vector.broadcast %cst_13 : f32 to vector<16x128xf32>
    %33 = arith.subf %32, %31 : vector<16x128xf32>
    %34 = arith.mulf %33, %33 : vector<16x128xf32>
    %cst_14 = arith.constant -2.500000e-01 : f32
    %35 = vector.broadcast %cst_14 : f32 to vector<16x128xf32>
    %36 = arith.mulf %35, %34 : vector<16x128xf32>
    %37 = arith.mulf %36, %4 : vector<16x128xf32>
    %38 = arith.mulf %37, %18 : vector<16x128xf32>
    %39 = arith.mulf %31, %31 : vector<16x128xf32>
    %cst_15 = arith.constant 7.500000e-01 : f32
    %40 = vector.broadcast %cst_15 : f32 to vector<16x128xf32>
    %41 = arith.mulf %40, %39 : vector<16x128xf32>
    %cst_16 = arith.constant 1.000000e+00 : f32
    %42 = vector.broadcast %cst_16 : f32 to vector<16x128xf32>
    %43 = arith.subf %42, %4 : vector<16x128xf32>
    %44 = arith.mulf %41, %43 : vector<16x128xf32>
    %45 = arith.mulf %44, %23 : vector<16x128xf32>
    %46 = arith.subf %38, %45 : vector<16x128xf32>
    %c0_17 = arith.constant 0 : index
    %c0_18 = arith.constant 0 : index
    %47 = vector.load %arg4[%c0_17, %c0_18] : memref<16x128xf32, #tpu.memory_space<vmem>>, vector<16x128xf32>
    %48 = arith.addf %47, %46 : vector<16x128xf32>
    %c0_19 = arith.constant 0 : index
    %c0_20 = arith.constant 0 : index
    %49 = vector.load %arg4[%c0_19, %c0_20] : memref<16x128xf32, #tpu.memory_space<vmem>>, vector<16x128xf32>
    tpu.vector_store %arg4[%c0_19, %c0_20], %48 {strides = array<i32>} : memref<16x128xf32, #tpu.memory_space<vmem>>, vector<16x128xf32>,
    return
  }
  func.func @transform_0(%arg0: i32, %arg1: i32) -> (i32, i32) {
    %c1_i32 = arith.constant 1 : i32
    %0 = arith.muli %arg0, %c1_i32 : i32
    %1 = arith.addi %0, %arg1 : i32
    %c0_i32 = arith.constant 0 : i32
    %c0_i32_0 = arith.constant 0 : i32
    return %1, %c0_i32 : i32, i32
  }
  func.func @transform_1(%arg0: i32, %arg1: i32) -> (i32, i32) {
    %c1_i32 = arith.constant 1 : i32
    %0 = arith.muli %arg0, %c1_i32 : i32
    %1 = arith.addi %0, %arg1 : i32
    %c0_i32 = arith.constant 0 : i32
    %c0_i32_0 = arith.constant 0 : i32
    return %1, %c0_i32 : i32, i32
  }
  func.func @transform_2(%arg0: i32, %arg1: i32) -> (i32, i32) {
    %c0_i32 = arith.constant 0 : i32
    %c0_i32_0 = arith.constant 0 : i32
    return %arg0, %c0_i32 : i32, i32
  }
}

</mosaic_0001>

<bundles_post_ra>
// kernel: tpu_custom_call.1
= control target key start
LH: loop header
LB: loop body
LE: loop exit
PB: predicated region body
PF: predicated region fallthrough
CT: control target
= control target key end

     0   :  { %7 = vsyncpa [#allocation3], 0  ;;  %s332_s0 = inlined_call_operand.hbm [shape: f32[16,128], index: 0, kind: input, shape index: {}]   ;;  %s333_s1 = inlined_call_operand.hbm [shape: f32[16,128], index: 1, kind: input, shape index: {}]   ;;  %s334_s2 = inlined_call_operand.hbm [shape: f32[16,128], index: 2, kind: output, shape index: {}]  }
   0x1   :  { %8 = vsyncpa [#allocation6], 0 }
   0x2   :  { %9 = vsyncpa [#allocation4], 0  ;;  %s18_s11 = sshll.u32 %s332_s0, 4  ;;  %s274_s12 = smov [#allocation2]   ;;  %s19_s11 = int_to_ptr.hbm [resolvable:$true] %s18_s11 }
   0x3   :  { %s20_s13 = sshll.u32 %s274_s12, 4  ;;  %s35_s16 = sshll.u32 %s333_s1, 4  ;;  %s21_s13 = int_to_ptr.vmem [resolvable:$true] %s20_s13  ;;  %s36_s16 = int_to_ptr.hbm [resolvable:$true] %s35_s16 }
   0x4   :  { %s275_s17 = smov 128   ;;  %s276_s18 = smov 8  }
   0x5   :  { %26 = dma.hbm_to_vmem [thread:$0]  %s19_s11, 256, %s21_s13, [#allocation3], %s275_s17, %s275_s17, %s276_s18  }
   0x6   :  { %s277_s19 = smov [#allocation5]  }
   0x7   :  { %s37_s20 = sshll.u32 %s277_s19, 4  ;;  %s38_s20 = int_to_ptr.vmem [resolvable:$true] %s37_s20 }
   0x8   :  { %43 = dma.hbm_to_vmem [thread:$0]  %s36_s16, 256, %s38_s20, [#allocation6], %s275_s17, %s275_s17, %s276_s18  }
   0x9   :  { %268 = dma.done.wait [#allocation3], 256  }
   0xa   :  { %269 = vsyncadd [#allocation3], 4294967040 }
   0xb   :  { %270 = dma.done.wait [#allocation6], 256  }
   0xc   :  { %271 = vsyncadd [#allocation6], 4294967040  ;;  %v306_v0 = vld [vmem:[#allocation2] sm:$0xff]  ;;  %v308_v1 = vld [vmem:[#allocation2 + $0x8] sm:$0xff]  ;;  %s278_s0 = smov [#allocation7]   ;;  %s164_s23 = sshll.u32 %s334_s2, 4  ;;  %s165_s23 = int_to_ptr.hbm [resolvable:$true] %s164_s23 }
   0xd   :  { %v66_v2 = vand.u32 2147483647, %v306_v0  ;;  %v67_v3 = vand.u32 2147483647, %v308_v1  ;;  %v80_v20 = vsub.f32 0.0, %v306_v0  ;;  %v88_v26 = vmax.f32 %v306_v0, 0.0 }
   0xe   :  { %v81_v29 = vsub.f32 0.0, %v308_v1  ;;  %v89_v34 = vmax.f32 %v308_v1, 0.0  ;;  %vm124_vm8 = vcmp.ge.f32.partialorder %v306_v0, 0.0  ;;  %v64_v40 = vld [vmem:[#allocation5] sm:$0xff]  ;;  %v65_v45 = vld [vmem:[#allocation5 + $0x8] sm:$0xff]  ;;  %vm125_vm9 = vcmp.ge.f32.partialorder %v308_v1, 0.0 }
   0xf   :  { %v68_v4 = vsub.f32 0.0, %v66_v2  ;;  %v69_v5 = vsub.f32 0.0, %v67_v3  ;;  %v82_v33 = vmax.f32 %v80_v20, 0.0  ;;  %v144_v53 = vsub.f32 1.0, %v64_v40  ;;  %s162_s1 = sshll.u32 %s278_s0, 4  ;;  %s163_s1 = int_to_ptr.vmem [resolvable:$true] %s162_s1 }
  0x10   :  { %v83_v43 = vmax.f32 %v81_v29, 0.0  ;;  %v145_v57 = vsub.f32 1.0, %v65_v45 }
  0x11   :  { %v70_v6 = vmul.f32 1.442695, %v68_v4  ;;  %v72_v7 = vmul.f32 1.442695, %v69_v5 }
  0x13   :  { %184 = vpow2.f32 %v70_v6 }
  0x14   :  { %186 = vpow2.f32 %v72_v7 }
  0x19   :  { %v185_v8 = vpop.eup %184 }
  0x1a   :  { %v187_v9 = vpop.eup %186  ;;  %v74_v10 = vadd.f32 1.0, %v185_v8 }
  0x1b   :  { %v75_v11 = vadd.f32 1.0, %v187_v9 }
  0x1c   :  { %188 = vrcp.f32 %v74_v10  ;;  %vm99_vm0 = vweird.f32 %v74_v10  ;;  %v105_v15 = vand.u32 2147483648, %v74_v10  ;;  %v103_v17 = vand.u32 2147483647, %v74_v10 }
  0x1d   :  { %190 = vrcp.f32 %v75_v11  ;;  %vm114_vm2 = vweird.f32 %v75_v11  ;;  %v120_v21 = vand.u32 2147483648, %v75_v11  ;;  %v118_v24 = vand.u32 2147483647, %v75_v11 }
  0x1e   :  { %192 = vlog2.f32 %v74_v10  ;;  %v106_v28 = vor.u32 1.1754944e-38, %v105_v15  ;;  %vm104_vm5 = vcmp.eq.f32.partialorder %v103_v17, 8.507059e+37 }
  0x1f   :  { %194 = vlog2.f32 %v75_v11  ;;  %v121_v35 = vor.u32 1.1754944e-38, %v120_v21  ;;  %vm119_vm7 = vcmp.eq.f32.partialorder %v118_v24, 8.507059e+37 }
  0x22   :  { %v189_v12 = vpop.eup %188 }
  0x23   :  { %v95_v13 = vmul.f32 %v189_v12, %v74_v10  ;;  %v191_v14 = vpop.eup %190  ;;  %vm100_vm1 = vweird.f32 %v189_v12 }
  0x24   :  { %v110_v18 = vmul.f32 %v191_v14, %v75_v11  ;;  %v193_v19 = vpop.eup %192  ;;  %vm115_vm3 = vweird.f32 %v191_v14  ;;  %vm315_vm4 = vmor %vm99_vm0, %vm100_vm1 }
  0x25   :  { %v96_v16 = vsub.f32 1.0, %v95_v13  ;;  %v195_v25 = vpop.eup %194  ;;  %v77_v30 = vmul.f32 0.6931472, %v193_v19  ;;  %vm116_vm6 = vmor %vm114_vm2, %vm115_vm3 }
  0x26   :  { %v111_v23 = vsub.f32 1.0, %v110_v18  ;;  %v79_v37 = vmul.f32 0.6931472, %v195_v25 }
  0x27   :  { %v97_v22 = vmul.f32 %v189_v12, %v96_v16  ;;  %v90_v41 = vadd.f32 %v88_v26, %v77_v30  ;;  %v84_v47 = vadd.f32 %v82_v33, %v77_v30 }
  0x28   :  { %v112_v32 = vmul.f32 %v191_v14, %v111_v23  ;;  %v91_v49 = vadd.f32 %v89_v34, %v79_v37  ;;  %v85_v55 = vadd.f32 %v83_v43, %v79_v37 }
  0x29   :  { %v98_v31 = vadd.f32 %v189_v12, %v97_v22  ;;  %v92_v54 = vsub.f32 0.0, %v90_v41  ;;  %v86_v62 = vsub.f32 0.0, %v84_v47 }
  0x2a   :  { %v113_v38 = vadd.f32 %v191_v14, %v112_v32  ;;  %v93_v63 = vsub.f32 0.0, %v91_v49  ;;  %v87_v4 = vsub.f32 0.0, %v85_v55 }
  0x2b   :  { %v102_v36 = vsel %vm315_vm4, %v189_v12, %v98_v31 }
  0x2c   :  { %v107_v39 = vsel %vm104_vm5, %v106_v28, %v102_v36  ;;  %v117_v44 = vsel %vm116_vm6, %v191_v14, %v113_v38 }
  0x2d   :  { %v126_v42 = vmul.f32 %v185_v8, %v107_v39  ;;  %v122_v46 = vsel %vm119_vm7, %v121_v35, %v117_v44 }
  0x2e   :  { %v127_v50 = vmul.f32 %v187_v9, %v122_v46 }
  0x2f   :  { %v128_v48 = vsel %vm124_vm8, %v107_v39, %v126_v42 }
  0x30   :  { %v130_v51 = vsub.f32 1.0, %v128_v48  ;;  %v140_v52 = vmul.f32 %v128_v48, %v128_v48  ;;  %v129_v56 = vsel %vm125_vm9, %v122_v46, %v127_v50 }
  0x31   :  { %v131_v60 = vsub.f32 1.0, %v129_v56  ;;  %v141_v61 = vmul.f32 %v129_v56, %v129_v56 }
  0x32   :  { %v132_v58 = vmul.f32 %v130_v51, %v130_v51  ;;  %v142_v59 = vmul.f32 0.75, %v140_v52 }
  0x33   :  { %v133_v1 = vmul.f32 %v131_v60, %v131_v60  ;;  %v143_v3 = vmul.f32 0.75, %v141_v61 }
  0x34   :  { %v134_v0 = vmul.f32 -0.25, %v132_v58  ;;  %v146_v2 = vmul.f32 %v144_v53, %v142_v59 }
  0x35   :  { %v135_v7 = vmul.f32 -0.25, %v133_v1  ;;  %v147_v8 = vmul.f32 %v145_v57, %v143_v3 }
  0x36   :  { %v136_v5 = vmul.f32 %v134_v0, %v64_v40  ;;  %v148_v6 = vmul.f32 %v146_v2, %v92_v54 }
  0x37   :  { %v137_v10 = vmul.f32 %v135_v7, %v65_v45  ;;  %v149_v11 = vmul.f32 %v147_v8, %v93_v63 }
  0x38   :  { %v138_v9 = vmul.f32 %v136_v5, %v86_v62 }
  0x39   :  { %v139_v13 = vmul.f32 %v137_v10, %v87_v4 }
  0x3a   :  { %v150_v12 = vsub.f32 %v138_v9, %v148_v6 }
  0x3b   :  { %v151_v14 = vsub.f32 %v139_v13, %v149_v11 }
  0x3c   :  { %156 = vst [vmem:[#allocation7] sm:$0xff] %v150_v12 }
  0x3d   :  { %157 = vst [vmem:[#allocation7 + $0x8] sm:$0xff] %v151_v14 }
  0x3e   :  { %170 = dma.vmem_to_hbm [thread:$0]  %s163_s1, 256, %s165_s23, [#allocation4], %s275_s17, %s275_s17, %s276_s18  }
  0x3f   :  { %272 = dma.done.wait [#allocation4], 256  }
  0x40   :  { %273 = vsyncadd [#allocation4], 4294967040 }
  0x41   :  { %175 = vsyncpa [#allocation3], 1 }
  0x42   :  { %176 = vsyncpa [#allocation6], 1 }
  0x43   :  { %177 = vsyncpa [#allocation4], 1 }

</bundles_post_ra>
